<compile_context>
chip_gen: v7x
topology: tpu7x:2x2x1
jax: 0.10.0
libtpu: 0.0.40
codegen_flags: <defaults>
</compile_context>

<pallas_src>
import math

import jax
import jax.numpy as jnp
from jax.experimental import pallas as pl
from jax.experimental.pallas import tpu as pltpu

_LANE = 128
_SUBLANE = 8
_TILE_BUDGET_BYTES = 3 * 1024 * 1024   # per-buffer; safe under v5e 16 MiB scoped VMEM
_MIN_TILE_BYTES = 1 * 1024 * 1024      # never shrink tiles below this for parallelism


def _copy_kernel(x_ref, o_ref):
    # Identity copy of one lane-dense tile.
    o_ref[...] = x_ref[...]


def _round_up(v, m):
    return ((v + m - 1) // m) * m


def flatten_layer(x: jax.Array, materialize_copy: bool = False) -> jax.Array:
    """Equivalent of torch FlattenLayer.forward: x.view(x.shape[0], -1).

    Flatten is metadata-only, so by default this returns the free reshape
    (zero HBM traffic, zero launch overhead).  Set ``materialize_copy=True``
    to route the elements through a lane-dense, tiled, pipelined Pallas
    identity-copy kernel (e.g. to force a distinct output buffer).
    """
    n = x.shape[0]
    d = math.prod(x.shape[1:]) if x.ndim > 1 else 1
    x2d = x.reshape(n, d)

    if not materialize_copy:
        return x2d

    total = n * d
    itemsize = jnp.dtype(x.dtype).itemsize

    # Irregular totals (not a multiple of 128 lanes): stay metadata-only
    # rather than mapping the whole array as one VMEM block (hard-failure
    # risk on v7x's 64 MiB physical / 32 MiB scoped VMEM for large inputs).
    # TODO(synk): could pad the flat stream to a multiple of 128 and slice back.
    if total % _LANE != 0:
        return x2d

    # Widest lane-dense retiling of the flat stream that divides total:
    # longer contiguous rows -> longer DMA bursts, fewer per-row descriptors.
    cols = _LANE
    for c in (8192, 4096, 2048, 1024, 512, 256, 128):
        if total % c == 0:
            cols = c
            break
    rows = total // cols
    x_flat = x2d.reshape(rows, cols)

    row_bytes = cols * itemsize

    # Largest multiple-of-8 row count whose tile fits the per-buffer budget.
    # cdiv grid + Pallas masking handles the trailing partial block, so no
    # exact-divisor search is needed and no shape degrades to tiny tiles.
    block_rows = max(_SUBLANE,
                     (_TILE_BUDGET_BYTES // row_bytes) // _SUBLANE * _SUBLANE)
    block_rows = min(block_rows, rows)
    grid_rows = pl.cdiv(rows, block_rows)

    # v7x megacore: the "parallel" axis shards across the 2 TensorCores; if a
    # single block covers everything but each half would still be >= ~1 MiB,
    # split so both cores get work.  (No-op cost on single-TC v5e/v6e.)
    if (grid_rows == 1 and rows > _SUBLANE
            and block_rows * row_bytes >= 2 * _MIN_TILE_BYTES):
        block_rows = min(_round_up(pl.cdiv(rows, 2), _SUBLANE), rows)
        grid_rows = pl.cdiv(rows, block_rows)

    cost = pl.CostEstimate(
        flops=0, transcendentals=0, bytes_accessed=2 * total * itemsize
    )

    out_flat = pl.pallas_call(
        _copy_kernel,
        out_shape=jax.ShapeDtypeStruct((rows, cols), x.dtype),
        grid=(grid_rows,),
        in_specs=[pl.BlockSpec((block_rows, cols), lambda i: (i, 0))],
        out_specs=pl.BlockSpec((block_rows, cols), lambda i: (i, 0)),
        compiler_params=pltpu.CompilerParams(
            dimension_semantics=("parallel",)
        ),
        cost_estimate=cost,
    )(x_flat)

    # Metadata-only reshape back to the PyTorch view shape (N, C*H*W).
    return out_flat.reshape(n, d)


if __name__ == "__main__":
    key = jax.random.PRNGKey(0)
    # Small NCHW input consistent with the module's expected conv-style input.
    x = jax.random.normal(key, (2, 4, 16, 16), dtype=jnp.float32)
    ref = x.reshape(x.shape[0], -1)

    # Default (recommended) path: metadata-only flatten.
    y_fast = flatten_layer(x)
    jax.block_until_ready(y_fast)
    assert y_fast.shape == (2, 4 * 16 * 16), y_fast.shape
    assert y_fast.dtype == x.dtype
    assert jnp.array_equal(y_fast, ref)

    # Materialized-copy path: exercises the Pallas identity-copy kernel once.
    y_copy = flatten_layer(x, materialize_copy=True)
    jax.block_until_ready(y_copy)
    assert y_copy.shape == (2, 4 * 16 * 16), y_copy.shape
    assert y_copy.dtype == x.dtype
    assert jnp.array_equal(y_copy, ref)

    print("KERNEL_OK")
</pallas_src>

<mosaic_0001>
module attributes {stable_mosaic.version = 11 : i64} {
  func.func @_copy_kernel(%arg0: i32, %arg1: memref<1x2048xf32, #tpu.memory_space<vmem>>, %arg2: memref<1x2048xf32, #tpu.memory_space<vmem>>) attributes {dimension_semantics = [#tpu.dimension_semantics<parallel>], iteration_bounds = array<i64: 1>, scalar_prefetch = 0 : i64, scratch_operands = 0 : i64, tpu.core_type = #tpu.core_type<tc>, window_params = [{transform_indices = @transform_0, window_bounds = array<i64: 1, 2048>}, {transform_indices = @transform_1, window_bounds = array<i64: 1, 2048>}]} {
    %c0 = arith.constant 0 : index
    %c0_0 = arith.constant 0 : index
    %0 = vector.load %arg1[%c0, %c0_0] : memref<1x2048xf32, #tpu.memory_space<vmem>>, vector<1x2048xf32>
    %c0_1 = arith.constant 0 : index
    %c0_2 = arith.constant 0 : index
    %1 = vector.load %arg2[%c0_1, %c0_2] : memref<1x2048xf32, #tpu.memory_space<vmem>>, vector<1x2048xf32>
    tpu.vector_store %arg2[%c0_1, %c0_2], %0 {strides = array<i32>} : memref<1x2048xf32, #tpu.memory_space<vmem>>, vector<1x2048xf32>,
    return
  }
  func.func @transform_0(%arg0: i32) -> (i32, i32) {
    %c0_i32 = arith.constant 0 : i32
    %c0_i32_0 = arith.constant 0 : i32
    return %arg0, %c0_i32 : i32, i32
  }
  func.func @transform_1(%arg0: i32) -> (i32, i32) {
    %c0_i32 = arith.constant 0 : i32
    %c0_i32_0 = arith.constant 0 : i32
    return %arg0, %c0_i32 : i32, i32
  }
}

</mosaic_0001>

<bundles_post_ra>
// kernel: tpu_custom_call.1
= control target key start
LH: loop header
LB: loop body
LE: loop exit
PB: predicated region body
PF: predicated region fallthrough
CT: control target
= control target key end

     0   :  { %6 = vsyncpa [#allocation3], 0  ;;  %s126_s0 = inlined_call_operand.hbm [shape: f32[1,2048], index: 0, kind: input, shape index: {}]   ;;  %s127_s1 = inlined_call_operand.hbm [shape: f32[1,2048], index: 1, kind: output, shape index: {}]  }
   0x1   :  { %7 = vsyncpa [#allocation4], 0  ;;  %s90_s6 = smov [#allocation2]   ;;  %s42_s10 = scalar_lea.hbm %s126_s0, 256 }
   0x2   :  { %s14_s7 = sshll.u32 %s90_s6, 4  ;;  %p43_p0 = scmp.ne.s32.totalorder %s126_s0, %s42_s10  ;;  %s15_s7 = int_to_ptr.vmem [resolvable:$true] %s14_s7 }
   0x3   :  { %p46_p1 = scmp.lt.u32.totalorder %s42_s10, %s126_s0 }
   0x5   :  { %p48_p2 = pnand %p46_p1, %p43_p0 }
   0x7   :  { %51 = shalt.err (!%p48_p2)
}
   0x8   :  { %s52_s15 = scalar_lea.vmem %s15_s7, 256  ;;  %p57_p4 = scmp.lt.s32.totalorder %s15_s7, %s15_s7 }
   0x9   :  { %p53_p3 = scmp.ne.s32.totalorder %s15_s7, %s52_s15  ;;  %p58_p5 = scmp.lt.s32.totalorder %s52_s15, %s52_s15 }
   0xb   :  { %p59_p6 = por %p58_p5, %p57_p4 }
   0xd   :  { %p60_p7 = pnand %p59_p6, %p53_p3 }
   0xf   :  { %63 = shalt.err (!%p60_p7)
}
  0x10   :  { %17 = dma.hbm_to_vmem [thread:$0]  %s126_s0, 256, %s15_s7, [#allocation3]  }
  0x11   :  { %86 = dma.done.wait [#allocation3], 256  }
  0x12   :  { %87 = vsyncadd [#allocation3], 4294967040  ;;  %s91_s18 = smov [#allocation5]   ;;  %v21_v0 = vld [vmem:[#allocation2] sm:$0xff]  ;;  %v22_v1 = vld [vmem:[#allocation2 + $0x8] sm:$0xff] }
  0x13   :  { %s31_s19 = sshll.u32 %s91_s18, 4  ;;  %23 = vst [vmem:[#allocation5] sm:$0xff] %v21_v0  ;;  %24 = vst [vmem:[#allocation5 + $0x8] sm:$0xff] %v22_v1  ;;  %s32_s19 = int_to_ptr.vmem [resolvable:$true] %s31_s19 }
  0x14   :  { %s64_s20 = scalar_lea.vmem %s32_s19, 256  ;;  %p69_p9 = scmp.lt.s32.totalorder %s32_s19, %s32_s19 }
  0x15   :  { %p65_p8 = scmp.ne.s32.totalorder %s32_s19, %s64_s20  ;;  %p70_p10 = scmp.lt.s32.totalorder %s64_s20, %s64_s20 }
  0x17   :  { %p71_p11 = por %p70_p10, %p69_p9 }
  0x19   :  { %p72_p12 = pnand %p71_p11, %p65_p8 }
  0x1b   :  { %75 = shalt.err (!%p72_p12)
}
  0x1c   :  { %s76_s0 = scalar_lea.hbm %s127_s1, 256 }
  0x1d   :  { %p77_p13 = scmp.ne.s32.totalorder %s127_s1, %s76_s0  ;;  %p80_p0 = scmp.lt.u32.totalorder %s76_s0, %s127_s1 }
  0x1f   :  { %p82_p1 = pnand %p80_p0, %p77_p13 }
  0x21   :  { %85 = shalt.err (!%p82_p1)
}
  0x22   :  { %34 = dma.vmem_to_hbm [thread:$0]  %s32_s19, 256, %s127_s1, [#allocation4]  }
  0x23   :  { %88 = dma.done.wait [#allocation4], 256  }
  0x24   :  { %89 = vsyncadd [#allocation4], 4294967040 }
  0x25   :  { %38 = vsyncpa [#allocation3], 1 }
  0x26   :  { %39 = vsyncpa [#allocation4], 1 }

</bundles_post_ra>
